<compile_context>
chip_gen: v6e
topology: v6e:2x2x1
jax: 0.10.0
libtpu: 0.0.40
codegen_flags: <defaults>
</compile_context>

<pallas_src>
import math

import jax
import jax.numpy as jnp
from jax.experimental import pallas as pl
from jax.experimental.pallas import tpu as pltpu


def _glu_mlp_kernel(x_ref, w1a_ref, b1a_ref, w1b_ref, b1b_ref, w2_ref, b2_ref,
                    o_ref, acc_ref):
    # x_ref:   (tm, Cin)    compute dtype (bf16 by default)
    # w1a_ref: (Cin, tg)    fc1 value-half weight chunk, pre-transposed
    # b1a_ref: (1, tg)      f32
    # w1b_ref: (Cin, tg)    fc1 gate-half weight chunk, pre-transposed
    # b1b_ref: (1, tg)      f32
    # w2_ref:  (tg, Cout)   fc2 weight chunk, pre-transposed
    # b2_ref:  (1, Cout)    f32
    # o_ref:   (tm, Cout)
    # acc_ref: (tm, Cout)   f32 accumulator over the G-chunk axis
    k = pl.program_id(1)

    @pl.when(k == 0)
    def _init():
        acc_ref[...] = jnp.zeros_like(acc_ref)

    x = x_ref[...]

    # fc1 on the MXU with f32 accumulation; value and gate halves are separate
    # matmuls, so no cross-lane chunk of the hidden activation is ever needed.
    h1 = jnp.dot(x, w1a_ref[...], preferred_element_type=jnp.float32) + b1a_ref[...]
    h2 = jnp.dot(x, w1b_ref[...], preferred_element_type=jnp.float32) + b1b_ref[...]

    # GLU gating (gate_last=True): x1 * sigmoid(x2).  Done in f32; exp -> EUP.
    gated = (h1 * jax.nn.sigmoid(h2)).astype(w2_ref.dtype)

    # fc2 chunk contribution, accumulated in f32.
    acc_ref[...] += jnp.dot(gated, w2_ref[...], preferred_element_type=jnp.float32)

    @pl.when(k == pl.num_programs(1) - 1)
    def _finalize():
        o_ref[...] = (acc_ref[...] + b2_ref[...]).astype(o_ref.dtype)


def _round_up(x, m):
    return (x + m - 1) // m * m


def _vmem_capacity_bytes():
    try:
        info = pltpu.get_tpu_info()
        cap = getattr(info, "vmem_capacity_bytes", None)
        if cap:
            return int(cap)
    except Exception:
        pass
    # Conservative default: v7x per-TensorCore VMEM.
    return 64 * 1024 * 1024


def glu_mlp(x, w1, b1, w2, b2, *, block_m=512, compute_dtype=jnp.bfloat16,
            single_buffer_resident_weights=True, x_buffers=2):
    """Fused GluMlp forward.

    x:  (..., in_features)
    w1: (hidden_features, in_features)        -- PyTorch nn.Linear layout
    b1: (hidden_features,)
    w2: (out_features, hidden_features // 2)
    b2: (out_features,)

    Note: weight transposes / casts / G-padding below constant-fold under jit
    when the weights are constants; for eager hot loops, pre-transpose once.
    """
    *lead, c_in = x.shape
    m = math.prod(lead) if lead else 1
    hidden, c_in_w = w1.shape
    assert c_in_w == c_in
    assert hidden % 2 == 0
    g = hidden // 2
    c_out, g_w = w2.shape
    assert g_w == g

    out_dtype = x.dtype
    if m == 0:  # empty leading dims: nothing to do
        return jnp.zeros((*lead, c_out), dtype=out_dtype)

    cdt = jnp.dtype(compute_dtype) if compute_dtype is not None else jnp.dtype(x.dtype)
    itemsize = cdt.itemsize
    out_itemsize = jnp.dtype(out_dtype).itemsize
    pack = {4: 8, 2: 16, 1: 32}.get(itemsize, 8)  # sublane packing per dtype

    # ---------------- weight / bias prep (gate_last=True: value=first half) ---
    w1_arr = jnp.asarray(w1)
    w1a = w1_arr[:g].T.astype(cdt)            # (Cin, G)  value half
    w1b = w1_arr[g:].T.astype(cdt)            # (Cin, G)  gate half
    w2t = jnp.asarray(w2).T.astype(cdt)       # (G, Cout)
    b1a = jnp.asarray(b1)[:g].astype(jnp.float32)
    b1b = jnp.asarray(b1)[g:].astype(jnp.float32)
    b2r = jnp.asarray(b2).reshape(1, c_out).astype(jnp.float32)

    # ---------------- tile / chunk selection ---------------------------------
    vmem_cap = _vmem_capacity_bytes()
    fit_budget = int(vmem_cap * 0.70)      # target for buffer sizing
    vmem_limit = int(vmem_cap * 0.85)      # compiler limit w/ headroom

    # Token tile: biggest that we allow, rounded to sublane packing; for small M
    # split in two so both TensorCores get work (v7x megacore).
    tm = min(block_m, _round_up(m, pack))
    if pl.cdiv(m, tm) == 1 and m > pack:
        tm = _round_up(pl.cdiv(m, 2), pack)

    g_pad = _round_up(g, 128)

    def _vmem_need(tm_, tg_, n_chunks_):
        resident_ = n_chunks_ == 1
        wbuf = 1 if (resident_ and single_buffer_resident_weights) else 2
        w_bytes = wbuf * itemsize * (2 * c_in * tg_ + tg_ * c_out)
        bias_bytes = wbuf * 4 * (2 * tg_ + c_out)
        x_bytes = max(2, x_buffers) * tm_ * c_in * itemsize
        o_bytes = 2 * tm_ * c_out * out_itemsize
        acc_bytes = tm_ * c_out * 4
        # h1, h2, gated (f32) + bf16 cast of gated + output f32 intermediate.
        inter_bytes = 4 * tm_ * (3 * tg_ + c_out) + tm_ * tg_ * itemsize
        return w_bytes + bias_bytes + x_bytes + o_bytes + acc_bytes + inter_bytes

    # Prefer fully resident weights (one G chunk); otherwise stream G chunks.
    tg = g_pad
    n_chunks = 1
    while _vmem_need(tm, tg, n_chunks) > fit_budget and tg > 128:
        n_chunks *= 2
        tg = _round_up(pl.cdiv(g_pad, n_chunks), 128)
    while _vmem_need(tm, tg, n_chunks) > fit_budget and tm > pack:
        tm = max(pack, _round_up(tm // 2, pack))

    g_total = _round_up(g_pad, tg)
    n_chunks = g_total // tg
    resident = n_chunks == 1

    # Zero-pad G (weights/bias only): pad gate bias 0 -> sigmoid(0)=0.5 but the
    # value half pad is 0 and W2 pad rows are 0, so results are unchanged.
    if g_total != g:
        pad = g_total - g
        w1a = jnp.pad(w1a, ((0, 0), (0, pad)))
        w1b = jnp.pad(w1b, ((0, 0), (0, pad)))
        w2t = jnp.pad(w2t, ((0, pad), (0, 0)))
        b1a = jnp.pad(b1a, (0, pad))
        b1b = jnp.pad(b1b, (0, pad))
    b1a = b1a.reshape(1, g_total)
    b1b = b1b.reshape(1, g_total)

    x2d = x.reshape(m, c_in).astype(cdt)
    n_m_tiles = pl.cdiv(m, tm)
    grid = (n_m_tiles, n_chunks)

    w_reads = 1 if resident else n_m_tiles
    cost = pl.CostEstimate(
        flops=int(2 * m * c_in * (2 * g_total) + 2 * m * g_total * c_out),
        transcendentals=int(m * g_total),
        bytes_accessed=int(
            itemsize * m * c_in
            + out_itemsize * m * c_out
            + w_reads * itemsize * (2 * c_in * g_total + g_total * c_out)
            + 4 * (2 * g_total + c_out)
        ),
    )

    def _build(use_pipeline_modes):
        w_mode = (pl.Buffered(1)
                  if (use_pipeline_modes and resident and single_buffer_resident_weights)
                  else None)
        x_mode = (pl.Buffered(x_buffers)
                  if (use_pipeline_modes and x_buffers != 2)
                  else None)

        def spec(shape, index_map, mode):
            if mode is None:
                return pl.BlockSpec(shape, index_map)
            return pl.BlockSpec(shape, index_map, pipeline_mode=mode)

        grid_spec = pltpu.PrefetchScalarGridSpec(
            num_scalar_prefetch=0,
            grid=grid,
            in_specs=[
                spec((tm, c_in), lambda i, k: (i, 0), x_mode),       # x tile
                spec((c_in, tg), lambda i, k: (0, k), w_mode),       # W1a^T chunk
                spec((1, tg), lambda i, k: (0, k), w_mode),          # b1a chunk
                spec((c_in, tg), lambda i, k: (0, k), w_mode),       # W1b^T chunk
                spec((1, tg), lambda i, k: (0, k), w_mode),          # b1b chunk
                spec((tg, c_out), lambda i, k: (k, 0), w_mode),      # W2^T chunk
                spec((1, c_out), lambda i, k: (0, 0), w_mode),       # b2
            ],
            out_specs=pl.BlockSpec((tm, c_out), lambda i, k: (i, 0)),
            scratch_shapes=[pltpu.VMEM((tm, c_out), jnp.float32)],
        )
        return pl.pallas_call(
            _glu_mlp_kernel,
            out_shape=jax.ShapeDtypeStruct((m, c_out), out_dtype),
            grid_spec=grid_spec,
            compiler_params=pltpu.CompilerParams(
                dimension_semantics=("parallel", "arbitrary"),
                vmem_limit_bytes=vmem_limit,
            ),
            cost_estimate=cost,
        )

    args = (x2d, w1a, b1a, w1b, b1b, w2t, b2r)
    needs_modes = (resident and single_buffer_resident_weights) or (x_buffers != 2)
    if not needs_modes:
        out2d = _build(False)(*args)
    else:
        try:
            out2d = _build(True)(*args)
        except Exception:
            # Fallback: installed jax rejects pipeline_mode; use defaults.
            out2d = _build(False)(*args)

    return out2d.reshape(*lead, c_out)


def reference(x, w1, b1, w2, b2):
    hp = jax.lax.Precision.HIGHEST
    h = jnp.einsum("...i,hi->...h", x, w1, precision=hp) + b1
    g = h.shape[-1] // 2
    x1, x2 = h[..., :g], h[..., g:]
    gated = x1 * jax.nn.sigmoid(x2)
    return jnp.einsum("...g,og->...o", gated, w2, precision=hp) + b2


if __name__ == "__main__":
    # Small shapes consistent with the module: batch=2, seq=8, in=32, hidden=32, out=32.
    B, N, C_IN, HIDDEN, C_OUT = 2, 8, 32, 32, 32
    G = HIDDEN // 2

    key = jax.random.PRNGKey(0)
    kx, kw1, kb1, kw2, kb2 = jax.random.split(key, 5)

    x = jax.random.normal(kx, (B, N, C_IN), dtype=jnp.float32)
    w1 = jax.random.normal(kw1, (HIDDEN, C_IN), dtype=jnp.float32) * 0.1
    b1 = jax.random.normal(kb1, (HIDDEN,), dtype=jnp.float32) * 0.1
    w2 = jax.random.normal(kw2, (C_OUT, G), dtype=jnp.float32) * 0.1
    b2 = jax.random.normal(kb2, (C_OUT,), dtype=jnp.float32) * 0.1

    ref = reference(x, w1, b1, w2, b2)

    # f32 compute path: strict check against HIGHEST-precision reference.
    out_f32 = jax.block_until_ready(
        glu_mlp(x, w1, b1, w2, b2, compute_dtype=jnp.float32))
    assert out_f32.shape == (B, N, C_OUT)
    err_f32 = float(jnp.max(jnp.abs(out_f32 - ref)))
    assert jnp.allclose(out_f32, ref, atol=1e-4, rtol=1e-4), \
        f"f32 mismatch vs reference, max err {err_f32}"

    # Default (bf16-operand) fast path: loose tolerance, still f32 accumulation.
    out_bf16 = jax.block_until_ready(glu_mlp(x, w1, b1, w2, b2))
    assert out_bf16.shape == (B, N, C_OUT)
    err_bf16 = float(jnp.max(jnp.abs(out_bf16 - ref)))
    assert jnp.allclose(out_bf16, ref, atol=5e-2, rtol=5e-2), \
        f"bf16 mismatch vs reference, max err {err_bf16}"

    print("KERNEL_OK")
</pallas_src>

<mosaic_0001>
module attributes {stable_mosaic.version = 11 : i64} {
  func.func @_glu_mlp_kernel(%arg0: i32, %arg1: i32, %arg2: memref<8x32xf32, #tpu.memory_space<vmem>>, %arg3: memref<32x128xf32, #tpu.memory_space<vmem>>, %arg4: memref<1x128xf32, #tpu.memory_space<vmem>>, %arg5: memref<32x128xf32, #tpu.memory_space<vmem>>, %arg6: memref<1x128xf32, #tpu.memory_space<vmem>>, %arg7: memref<128x32xf32, #tpu.memory_space<vmem>>, %arg8: memref<1x32xf32, #tpu.memory_space<vmem>>, %arg9: memref<8x32xf32, #tpu.memory_space<vmem>>, %arg10: memref<8x32xf32, #tpu.memory_space<vmem>>) attributes {dimension_semantics = [#tpu.dimension_semantics<parallel>, #tpu.dimension_semantics<arbitrary>], iteration_bounds = array<i64: 2, 1>, scalar_prefetch = 0 : i64, scratch_operands = 1 : i64, tpu.core_type = #tpu.core_type<tc>, window_params = [{transform_indices = @transform_0, window_bounds = array<i64: 8, 32>}, {pipeline_mode = #tpu.pipeline_mode<synchronous>, transform_indices = @transform_1, window_bounds = array<i64: 32, 128>}, {pipeline_mode = #tpu.pipeline_mode<synchronous>, transform_indices = @transform_2, window_bounds = array<i64: 1, 128>}, {pipeline_mode = #tpu.pipeline_mode<synchronous>, transform_indices = @transform_3, window_bounds = array<i64: 32, 128>}, {pipeline_mode = #tpu.pipeline_mode<synchronous>, transform_indices = @transform_4, window_bounds = array<i64: 1, 128>}, {pipeline_mode = #tpu.pipeline_mode<synchronous>, transform_indices = @transform_5, window_bounds = array<i64: 128, 32>}, {pipeline_mode = #tpu.pipeline_mode<synchronous>, transform_indices = @transform_6, window_bounds = array<i64: 1, 32>}, {transform_indices = @transform_7, window_bounds = array<i64: 8, 32>}]} {
    %c0_i32 = arith.constant 0 : i32
    %0 = arith.cmpi eq, %arg1, %c0_i32 : i32
    %1 = arith.extui %0 : i1 to i32
    %c0_i32_0 = arith.constant 0 : i32
    %2 = arith.cmpi ne, %1, %c0_i32_0 : i32
    scf.if %2 {
      %cst_21 = arith.constant 0.000000e+00 : f32
      %28 = vector.broadcast %cst_21 : f32 to vector<8x32xf32>
      %c0_22 = arith.constant 0 : index
      %c0_23 = arith.constant 0 : index
      %29 = vector.load %arg10[%c0_22, %c0_23] : memref<8x32xf32, #tpu.memory_space<vmem>>, vector<8x32xf32>
      tpu.vector_store %arg10[%c0_22, %c0_23], %28 {strides = array<i32>} : memref<8x32xf32, #tpu.memory_space<vmem>>, vector<8x32xf32>,
    } else {
    }
    %c0 = arith.constant 0 : index
    %c0_1 = arith.constant 0 : index
    %3 = vector.load %arg2[%c0, %c0_1] : memref<8x32xf32, #tpu.memory_space<vmem>>, vector<8x32xf32>
    %c0_2 = arith.constant 0 : index
    %c0_3 = arith.constant 0 : index
    %4 = vector.load %arg3[%c0_2, %c0_3] : memref<32x128xf32, #tpu.memory_space<vmem>>, vector<32x128xf32>
    %cst = arith.constant dense<0.000000e+00> : vector<8x128xf32>
    %5 = tpu.matmul %3, %4, %cst {dimension_numbers = #tpu.dot_dimension_numbers<[1], [0], [0], [1], [0, 0, 1, 1], [], []>} : vector<8x32xf32>, vector<32x128xf32>, vector<8x128xf32> -> vector<8x128xf32>
    %c0_4 = arith.constant 0 : index
    %c0_5 = arith.constant 0 : index
    %6 = vector.load %arg4[%c0_4, %c0_5] : memref<1x128xf32, #tpu.memory_space<vmem>>, vector<1x128xf32>
    %7 = vector.broadcast %6 : vector<1x128xf32> to vector<8x128xf32>
    %8 = arith.addf %5, %7 : vector<8x128xf32>
    %c0_6 = arith.constant 0 : index
    %c0_7 = arith.constant 0 : index
    %9 = vector.load %arg5[%c0_6, %c0_7] : memref<32x128xf32, #tpu.memory_space<vmem>>, vector<32x128xf32>
    %cst_8 = arith.constant dense<0.000000e+00> : vector<8x128xf32>
    %10 = tpu.matmul %3, %9, %cst_8 {dimension_numbers = #tpu.dot_dimension_numbers<[1], [0], [0], [1], [0, 0, 1, 1], [], []>} : vector<8x32xf32>, vector<32x128xf32>, vector<8x128xf32> -> vector<8x128xf32>
    %c0_9 = arith.constant 0 : index
    %c0_10 = arith.constant 0 : index
    %11 = vector.load %arg6[%c0_9, %c0_10] : memref<1x128xf32, #tpu.memory_space<vmem>>, vector<1x128xf32>
    %12 = vector.broadcast %11 : vector<1x128xf32> to vector<8x128xf32>
    %13 = arith.addf %10, %12 : vector<8x128xf32>
    %14 = arith.negf %13 : vector<8x128xf32>
    %15 = math.exp %14 : vector<8x128xf32>
    %cst_11 = arith.constant 1.000000e+00 : f32
    %16 = vector.broadcast %cst_11 : f32 to vector<8x128xf32>
    %17 = arith.addf %16, %15 : vector<8x128xf32>
    %18 = arith.divf %16, %17 : vector<8x128xf32>
    %19 = arith.mulf %8, %18 : vector<8x128xf32>
    %c0_12 = arith.constant 0 : index
    %c0_13 = arith.constant 0 : index
    %20 = vector.load %arg10[%c0_12, %c0_13] : memref<8x32xf32, #tpu.memory_space<vmem>>, vector<8x32xf32>
    %c0_14 = arith.constant 0 : index
    %c0_15 = arith.constant 0 : index
    %21 = vector.load %arg7[%c0_14, %c0_15] : memref<128x32xf32, #tpu.memory_space<vmem>>, vector<128x32xf32>
    %cst_16 = arith.constant dense<0.000000e+00> : vector<8x32xf32>
    %22 = tpu.matmul %19, %21, %cst_16 {dimension_numbers = #tpu.dot_dimension_numbers<[1], [0], [0], [1], [0, 0, 1, 1], [], []>} : vector<8x128xf32>, vector<128x32xf32>, vector<8x32xf32> -> vector<8x32xf32>
    %23 = arith.addf %20, %22 : vector<8x32xf32>
    %c0_17 = arith.constant 0 : index
    %c0_18 = arith.constant 0 : index
    %24 = vector.load %arg10[%c0_17, %c0_18] : memref<8x32xf32, #tpu.memory_space<vmem>>, vector<8x32xf32>
    tpu.vector_store %arg10[%c0_17, %c0_18], %23 {strides = array<i32>} : memref<8x32xf32, #tpu.memory_space<vmem>>, vector<8x32xf32>,
    %c0_i32_19 = arith.constant 0 : i32
    %25 = arith.cmpi eq, %arg1, %c0_i32_19 : i32
    %26 = arith.extui %25 : i1 to i32
    %c0_i32_20 = arith.constant 0 : i32
    %27 = arith.cmpi ne, %26, %c0_i32_20 : i32
    scf.if %27 {
      %c0_21 = arith.constant 0 : index
      %c0_22 = arith.constant 0 : index
      %28 = vector.load %arg10[%c0_21, %c0_22] : memref<8x32xf32, #tpu.memory_space<vmem>>, vector<8x32xf32>
      %c0_23 = arith.constant 0 : index
      %c0_24 = arith.constant 0 : index
      %29 = vector.load %arg8[%c0_23, %c0_24] : memref<1x32xf32, #tpu.memory_space<vmem>>, vector<1x32xf32>
      %30 = vector.broadcast %29 : vector<1x32xf32> to vector<8x32xf32>
      %31 = arith.addf %28, %30 : vector<8x32xf32>
      %c0_25 = arith.constant 0 : index
      %c0_26 = arith.constant 0 : index
      %32 = vector.load %arg9[%c0_25, %c0_26] : memref<8x32xf32, #tpu.memory_space<vmem>>, vector<8x32xf32>
      tpu.vector_store %arg9[%c0_25, %c0_26], %31 {strides = array<i32>} : memref<8x32xf32, #tpu.memory_space<vmem>>, vector<8x32xf32>,
    } else {
    }
    return
  }
  func.func @transform_0(%arg0: i32, %arg1: i32) -> (i32, i32) {
    %c0_i32 = arith.constant 0 : i32
    %c0_i32_0 = arith.constant 0 : i32
    return %arg0, %c0_i32 : i32, i32
  }
  func.func @transform_1(%arg0: i32, %arg1: i32) -> (i32, i32) {
    %c0_i32 = arith.constant 0 : i32
    %c0_i32_0 = arith.constant 0 : i32
    return %c0_i32, %arg1 : i32, i32
  }
  func.func @transform_2(%arg0: i32, %arg1: i32) -> (i32, i32) {
    %c0_i32 = arith.constant 0 : i32
    %c0_i32_0 = arith.constant 0 : i32
    return %c0_i32, %arg1 : i32, i32
  }
  func.func @transform_3(%arg0: i32, %arg1: i32) -> (i32, i32) {
    %c0_i32 = arith.constant 0 : i32
    %c0_i32_0 = arith.constant 0 : i32
    return %c0_i32, %arg1 : i32, i32
  }
  func.func @transform_4(%arg0: i32, %arg1: i32) -> (i32, i32) {
    %c0_i32 = arith.constant 0 : i32
    %c0_i32_0 = arith.constant 0 : i32
    return %c0_i32, %arg1 : i32, i32
  }
  func.func @transform_5(%arg0: i32, %arg1: i32) -> (i32, i32) {
    %c0_i32 = arith.constant 0 : i32
    %c0_i32_0 = arith.constant 0 : i32
    return %arg1, %c0_i32 : i32, i32
  }
  func.func @transform_6(%arg0: i32, %arg1: i32) -> (i32, i32) {
    %c0_i32 = arith.constant 0 : i32
    %c0_i32_0 = arith.constant 0 : i32
    %c0_i32_1 = arith.constant 0 : i32
    return %c0_i32, %c0_i32_0 : i32, i32
  }
  func.func @transform_7(%arg0: i32, %arg1: i32) -> (i32, i32) {
    %c0_i32 = arith.constant 0 : i32
    %c0_i32_0 = arith.constant 0 : i32
    return %arg0, %c0_i32 : i32, i32
  }
}

module attributes {stable_mosaic.version = 11 : i64} {
  func.func @_glu_mlp_kernel(%arg0: i32, %arg1: i32, %arg2: memref<8x32xf32, #tpu.memory_space<vmem>>, %arg3: memref<32x128xf32, #tpu.memory_space<vmem>>, %arg4: memref<1x128xf32, #tpu.memory_space<vmem>>, %arg5: memref<32x128xf32, #tpu.memory_space<vmem>>, %arg6: memref<1x128xf32, #tpu.memory_space<vmem>>, %arg7: memref<128x32xf32, #tpu.memory_space<vmem>>, %arg8: memref<1x32xf32, #tpu.memory_space<vmem>>, %arg9: memref<8x32xf32, #tpu.memory_space<vmem>>, %arg10: memref<8x32xf32, #tpu.memory_space<vmem>>) attributes {dimension_semantics = [#tpu.dimension_semantics<parallel>, #tpu.dimension_semantics<arbitrary>], iteration_bounds = array<i64: 2, 1>, scalar_prefetch = 0 : i64, scratch_operands = 1 : i64, tpu.core_type = #tpu.core_type<tc>, window_params = [{transform_indices = @transform_0, window_bounds = array<i64: 8, 32>}, {transform_indices = @transform_1, window_bounds = array<i64: 32, 128>}, {transform_indices = @transform_2, window_bounds = array<i64: 1, 128>}, {transform_indices = @transform_3, window_bounds = array<i64: 32, 128>}, {transform_indices = @transform_4, window_bounds = array<i64: 1, 128>}, {transform_indices = @transform_5, window_bounds = array<i64: 128, 32>}, {pipeline_mode = #tpu.pipeline_mode<synchronous>, transform_indices = @transform_6, window_bounds = array<i64: 1, 32>}, {transform_indices = @transform_7, window_bounds = array<i64: 8, 32>}]} {
    %c0_i32 = arith.constant 0 : i32
    %0 = arith.cmpi eq, %arg1, %c0_i32 : i32
    %1 = arith.extui %0 : i1 to i32
    %c0_i32_0 = arith.constant 0 : i32
    %2 = arith.cmpi ne, %1, %c0_i32_0 : i32
    scf.if %2 {
      %cst_21 = arith.constant 0.000000e+00 : f32
      %28 = vector.broadcast %cst_21 : f32 to vector<8x32xf32>
      %c0_22 = arith.constant 0 : index
      %c0_23 = arith.constant 0 : index
      %29 = vector.load %arg10[%c0_22, %c0_23] : memref<8x32xf32, #tpu.memory_space<vmem>>, vector<8x32xf32>
      tpu.vector_store %arg10[%c0_22, %c0_23], %28 {strides = array<i32>} : memref<8x32xf32, #tpu.memory_space<vmem>>, vector<8x32xf32>,
    } else {
    }
    %c0 = arith.constant 0 : index
    %c0_1 = arith.constant 0 : index
    %3 = vector.load %arg2[%c0, %c0_1] : memref<8x32xf32, #tpu.memory_space<vmem>>, vector<8x32xf32>
    %c0_2 = arith.constant 0 : index
    %c0_3 = arith.constant 0 : index
    %4 = vector.load %arg3[%c0_2, %c0_3] : memref<32x128xf32, #tpu.memory_space<vmem>>, vector<32x128xf32>
    %cst = arith.constant dense<0.000000e+00> : vector<8x128xf32>
    %5 = tpu.matmul %3, %4, %cst {dimension_numbers = #tpu.dot_dimension_numbers<[1], [0], [0], [1], [0, 0, 1, 1], [], []>} : vector<8x32xf32>, vector<32x128xf32>, vector<8x128xf32> -> vector<8x128xf32>
    %c0_4 = arith.constant 0 : index
    %c0_5 = arith.constant 0 : index
    %6 = vector.load %arg4[%c0_4, %c0_5] : memref<1x128xf32, #tpu.memory_space<vmem>>, vector<1x128xf32>
    %7 = vector.broadcast %6 : vector<1x128xf32> to vector<8x128xf32>
    %8 = arith.addf %5, %7 : vector<8x128xf32>
    %c0_6 = arith.constant 0 : index
    %c0_7 = arith.constant 0 : index
    %9 = vector.load %arg5[%c0_6, %c0_7] : memref<32x128xf32, #tpu.memory_space<vmem>>, vector<32x128xf32>
    %cst_8 = arith.constant dense<0.000000e+00> : vector<8x128xf32>
    %10 = tpu.matmul %3, %9, %cst_8 {dimension_numbers = #tpu.dot_dimension_numbers<[1], [0], [0], [1], [0, 0, 1, 1], [], []>} : vector<8x32xf32>, vector<32x128xf32>, vector<8x128xf32> -> vector<8x128xf32>
    %c0_9 = arith.constant 0 : index
    %c0_10 = arith.constant 0 : index
    %11 = vector.load %arg6[%c0_9, %c0_10] : memref<1x128xf32, #tpu.memory_space<vmem>>, vector<1x128xf32>
    %12 = vector.broadcast %11 : vector<1x128xf32> to vector<8x128xf32>
    %13 = arith.addf %10, %12 : vector<8x128xf32>
    %14 = arith.negf %13 : vector<8x128xf32>
    %15 = math.exp %14 : vector<8x128xf32>
    %cst_11 = arith.constant 1.000000e+00 : f32
    %16 = vector.broadcast %cst_11 : f32 to vector<8x128xf32>
    %17 = arith.addf %16, %15 : vector<8x128xf32>
    %18 = arith.divf %16, %17 : vector<8x128xf32>
    %19 = arith.mulf %8, %18 : vector<8x128xf32>
    %c0_12 = arith.constant 0 : index
    %c0_13 = arith.constant 0 : index
    %20 = vector.load %arg10[%c0_12, %c0_13] : memref<8x32xf32, #tpu.memory_space<vmem>>, vector<8x32xf32>
    %c0_14 = arith.constant 0 : index
    %c0_15 = arith.constant 0 : index
    %21 = vector.load %arg7[%c0_14, %c0_15] : memref<128x32xf32, #tpu.memory_space<vmem>>, vector<128x32xf32>
    %cst_16 = arith.constant dense<0.000000e+00> : vector<8x32xf32>
    %22 = tpu.matmul %19, %21, %cst_16 {dimension_numbers = #tpu.dot_dimension_numbers<[1], [0], [0], [1], [0, 0, 1, 1], [], []>} : vector<8x128xf32>, vector<128x32xf32>, vector<8x32xf32> -> vector<8x32xf32>
    %23 = arith.addf %20, %22 : vector<8x32xf32>
    %c0_17 = arith.constant 0 : index
    %c0_18 = arith.constant 0 : index
    %24 = vector.load %arg10[%c0_17, %c0_18] : memref<8x32xf32, #tpu.memory_space<vmem>>, vector<8x32xf32>
    tpu.vector_store %arg10[%c0_17, %c0_18], %23 {strides = array<i32>} : memref<8x32xf32, #tpu.memory_space<vmem>>, vector<8x32xf32>,
    %c0_i32_19 = arith.constant 0 : i32
    %25 = arith.cmpi eq, %arg1, %c0_i32_19 : i32
    %26 = arith.extui %25 : i1 to i32
    %c0_i32_20 = arith.constant 0 : i32
    %27 = arith.cmpi ne, %26, %c0_i32_20 : i32
    scf.if %27 {
      %c0_21 = arith.constant 0 : index
      %c0_22 = arith.constant 0 : index
      %28 = vector.load %arg10[%c0_21, %c0_22] : memref<8x32xf32, #tpu.memory_space<vmem>>, vector<8x32xf32>
      %c0_23 = arith.constant 0 : index
      %c0_24 = arith.constant 0 : index
      %29 = vector.load %arg8[%c0_23, %c0_24] : memref<1x32xf32, #tpu.memory_space<vmem>>, vector<1x32xf32>
      %30 = vector.broadcast %29 : vector<1x32xf32> to vector<8x32xf32>
      %31 = arith.addf %28, %30 : vector<8x32xf32>
      %c0_25 = arith.constant 0 : index
      %c0_26 = arith.constant 0 : index
      %32 = vector.load %arg9[%c0_25, %c0_26] : memref<8x32xf32, #tpu.memory_space<vmem>>, vector<8x32xf32>
      tpu.vector_store %arg9[%c0_25, %c0_26], %31 {strides = array<i32>} : memref<8x32xf32, #tpu.memory_space<vmem>>, vector<8x32xf32>,
    } else {
    }
    return
  }
  func.func @transform_0(%arg0: i32, %arg1: i32) -> (i32, i32) {
    %c0_i32 = arith.constant 0 : i32
    %c0_i32_0 = arith.constant 0 : i32
    return %arg0, %c0_i32 : i32, i32
  }
  func.func @transform_1(%arg0: i32, %arg1: i32) -> (i32, i32) {
    %c0_i32 = arith.constant 0 : i32
    %c0_i32_0 = arith.constant 0 : i32
    return %c0_i32, %arg1 : i32, i32
  }
  func.func @transform_2(%arg0: i32, %arg1: i32) -> (i32, i32) {
    %c0_i32 = arith.constant 0 : i32
    %c0_i32_0 = arith.constant 0 : i32
    return %c0_i32, %arg1 : i32, i32
  }
  func.func @transform_3(%arg0: i32, %arg1: i32) -> (i32, i32) {
    %c0_i32 = arith.constant 0 : i32
    %c0_i32_0 = arith.constant 0 : i32
    return %c0_i32, %arg1 : i32, i32
  }
  func.func @transform_4(%arg0: i32, %arg1: i32) -> (i32, i32) {
    %c0_i32 = arith.constant 0 : i32
    %c0_i32_0 = arith.constant 0 : i32
    return %c0_i32, %arg1 : i32, i32
  }
  func.func @transform_5(%arg0: i32, %arg1: i32) -> (i32, i32) {
    %c0_i32 = arith.constant 0 : i32
    %c0_i32_0 = arith.constant 0 : i32
    return %arg1, %c0_i32 : i32, i32
  }
  func.func @transform_6(%arg0: i32, %arg1: i32) -> (i32, i32) {
    %c0_i32 = arith.constant 0 : i32
    %c0_i32_0 = arith.constant 0 : i32
    %c0_i32_1 = arith.constant 0 : i32
    return %c0_i32, %c0_i32_0 : i32, i32
  }
  func.func @transform_7(%arg0: i32, %arg1: i32) -> (i32, i32) {
    %c0_i32 = arith.constant 0 : i32
    %c0_i32_0 = arith.constant 0 : i32
    return %arg0, %c0_i32 : i32, i32
  }
}

</mosaic_0001>

<bundles_post_ra>
// kernel: tpu_custom_call.1
= control target key start
LH: loop header
LB: loop body
LE: loop exit
PB: predicated region body
PF: predicated region fallthrough
CT: control target
= control target key end

     0   :  { %12 = vsyncpa [#allocation4], 0  ;;  %s1306_s0 = inlined_call_operand.vmem [shape: f32[16,32], index: 0, kind: input, shape index: {}]   ;;  %s1307_s1 = inlined_call_operand.vmem [shape: f32[32,128], index: 1, kind: input, shape index: {}]   ;;  %s1308_s2 = inlined_call_operand.vmem [shape: f32[1,128], index: 2, kind: input, shape index: {}]   ;;  %s1309_s3 = inlined_call_operand.vmem [shape: f32[32,128], index: 3, kind: input, shape index: {}]   ;;  %s1310_s4 = inlined_call_operand.vmem [shape: f32[1,128], index: 4, kind: input, shape index: {}]   ;;  %s1311_s5 = inlined_call_operand.vmem [shape: f32[128,32], index: 5, kind: input, shape index: {}]   ;;  %s1312_s6 = inlined_call_operand.vmem [shape: f32[1,32], index: 6, kind: input, shape index: {}]   ;;  %s1313_s7 = inlined_call_operand.hbm [shape: f32[16,32], index: 7, kind: output, shape index: {}]  }
   0x1   :  { %14 = vsyncpa [#allocation4 + $0x1], 0  ;;  %s1090_s24 = smov 0   ;;  %s1092_s25 = smov 0  }
   0x2   :  { %s1094_s26 = smov 0   ;;  %s1096_s27 = smov 0  }
   0x3   :  { %s1098_s28 = smov 0   ;;  %s1100_s29 = smov 0  }
   0x4 LB: > { %s802_s30 = sadd.s32 4294967295, %s1045_s29   ;;  %s803_s8 = sadd.s32 4294967294, %s1045_s29   ;;  %s1045_s29 = sphi %s1100_s29, %s20_s29   ;;  %s1041_s28 = sphi %s1098_s28, %s1320_s28   ;;  %s1037_s27 = sphi %s1096_s27, %s1319_s27   ;;  %s1033_s26 = sphi %s1094_s26, %s1318_s26   ;;  %s1029_s25 = sphi %s1092_s25, %s1317_s25   ;;  %s1025_s24 = sphi %s1090_s24, %s1316_s24  }
   0x5   : > { %s32_s9 = sadd.s32 1, %s1041_s28  ;;  %s216_s10 = sadd.s32 1, %s1033_s26 }
   0x6   : > { %p34_p0 = scmp.ge.s32.totalorder %s32_s9, 2  ;;  %p226_p1 = scmp.ne.s32.totalorder %s1033_s26, %s1029_s25 }
   0x7   : > { %p227_p2 = scmp.eq.s32.totalorder %s802_s30, 1  ;;  %p232_p3 = scmp.ne.s32.totalorder %s1029_s25, %s1025_s24 }
   0x8   : > { %s1322_s9 = smov (%p34_p0, %s32_s9), 0  ;;  %p233_p5 = scmp.eq.s32.totalorder %s803_s8, 1 }
   0x9   : > { %p1130_p4 = por %p227_p2, %p226_p1  ;;  %s213_s12 = ssub.s32 %s1041_s28, %s1322_s9 }
   0xa   : > { %p811_p6 = scmp.ge.s32.totalorder %s1045_s29, 1  ;;  %p214_p7 = scmp.eq.s32.totalorder %s213_s12, 0 }
   0xb   : > { %p1137_p8 = por %p233_p5, %p232_p3  ;;  %p296_p9 = scmp.lt.s32.totalorder %s1045_s29, 3 }
   0xc   : > { %s1143_s14 = scalar_select %p214_p7, %s1033_s26, %s216_s10  }
   0xd   : > { %p297_p10 = pnand %p811_p6, %p296_p9 }
   0xe   : > { %p346_p11 = scmp.lt.s32.totalorder (!%p297_p10), %s1037_s27, 1  ;;  %s343_s20 = sand.u32 (!%p297_p10), 1, %s1029_s25  }
   0xf   : > { %300 = sbr.rel (%p297_p10) target bundleno = 484 (0x1e4), region = 48  ;;  %s812_s21 = sshll.u32 (!%p297_p10), %s343_s20, 3 }
  0x10   : > { %s821_s30 = sshll.u32 (!%p297_p10), %s1037_s27, 7  ;;  %s345_s8 = scalar_lea.vmem (!%p297_p10), [#allocation3], %s812_s21 }
  0x11   : > { %s666_s10 = sshll.u32 (!%p297_p10), %s345_s8, 4  ;;  %s664_s16 = scalar_lea.hbm (!%p297_p10), %s1313_s7, %s821_s30  ;;  %s667_s10 = int_to_ptr.vmem [resolvable:$true] %s666_s10 }
  0x12   : > { %s653_s17 = scalar_lea.sflag (!%p297_p10), [#allocation4], %s343_s20  ;;  %s969_s18 = scalar_lea.vmem (!%p297_p10), %s667_s10, 128 }
  0x13   : > { %p970_p12 = scmp.ne.s32.totalorder (!%p297_p10), %s667_s10, %s969_s18 }
  0x14   : > { %v380_v0 = vld [vmem:[%s1307_s1 + $0x18] sm:$0xff]  ;;  %v1047_v1 = vmov 0.0   ;;  %v379_v2 = vld [vmem:[%s1307_s1 + $0x10] sm:$0xff]  ;;  %vm1048_vm0 = vmmov 0   ;;  %vm374_vm1 = vcmask 261120   ;;  %s347_s19 = scalar_select %p346_p11, %s1037_s27, 1 }
  0x15   : > { %851 = vmatprep.subr.mxu1 %v1047_v1  ;;  %859 = vmatprep.mubr.msk.f32.mxu1 %vm1048_vm0, %v1047_v1  ;;  %375 = vst.msk [vmem:[#allocation2] sm:$0xff] %vm374_vm1, %v1047_v1  ;;  %v378_v3 = vld [vmem:[%s1307_s1 + $0x8] sm:$0xff]  ;;  %v377_v4 = vld [vmem:[%s1307_s1] sm:$0xff]  ;;  %v465_v6 = vld [vmem:[%s1309_s3 + $0x18] sm:$0xff]  ;;  %p971_p13 = pnand %p970_p12, %p1130_p4 }
  0x16   : > { %852 = vmatpush3.msra.mxu1 %v380_v0  ;;  %873 = vmatprep.subr.mxu0 %v1047_v1  ;;  %s813_s22 = sshll.u32 %s347_s19, 3  ;;  %v464_v7 = vld [vmem:[%s1309_s3 + $0x10] sm:$0xff]  ;;  %v463_v8 = vld [vmem:[%s1309_s3 + $0x8] sm:$0xff]  ;;  %v462_v9 = vld [vmem:[%s1309_s3] sm:$0xff]  ;;  %s1049_s19 = smov [#allocation3]  }
  0x17   : > { %853 = vmatprep.subr.mxu1 %v1047_v1  ;;  %905 = vmatprep.mubr.msk.f32.mxu0 %vm1048_vm0, %v1047_v1  ;;  %s349_s12 = scalar_lea.vmem %s1306_s0, %s813_s22  ;;  %v566_v10 = vld [vmem:[%s1311_s5 + $0x78] sm:$0xff]  ;;  %v565_v11 = vld [vmem:[%s1311_s5 + $0x70] sm:$0xff]  ;;  %v564_v12 = vld [vmem:[%s1311_s5 + $0x68] sm:$0xff]  ;;  %p972_p0 = pneg %p971_p13 }
  0x18   : > { %854 = vmatpush3.msra.mxu1 %v379_v2  ;;  %v376_v5 = vld [vmem:[%s349_s12] sm:$0xff]  ;;  %874 = vmatpush3.msra.mxu0 %v566_v10  ;;  %v562_v14 = vld [vmem:[%s1311_s5 + $0x58] sm:$0xff]  ;;  %v561_v15 = vld [vmem:[%s1311_s5 + $0x50] sm:$0xff]  ;;  %s973_s22 = sshll.u32 %s1049_s19, 4  ;;  %s974_s22 = int_to_ptr.vmem [resolvable:$false] %s973_s22 }
  0x19   : > { %855 = vmatprep.subr.mxu1 %v1047_v1  ;;  %875 = vmatprep.subr.mxu0 %v1047_v1  ;;  %v563_v13 = vld [vmem:[%s1311_s5 + $0x60] sm:$0xff]  ;;  %v560_v16 = vld [vmem:[%s1311_s5 + $0x48] sm:$0xff]  ;;  %v558_v18 = vld [vmem:[%s1311_s5 + $0x38] sm:$0xff]  ;;  %s975_s27 = scalar_lea.vmem %s974_s22, 256  ;;  %p976_p1 = scmp.lt.s32.totalorder %s667_s10, %s974_s22 }
  0x1a   : > { %856 = vmatpush3.msra.mxu1 %v378_v3  ;;  %876 = vmatpush3.msra.mxu0 %v565_v11  ;;  %v559_v17 = vld [vmem:[%s1311_s5 + $0x40] sm:$0xff]  ;;  %v557_v19 = vld [vmem:[%s1311_s5 + $0x30] sm:$0xff]  ;;  %v556_v20 = vld [vmem:[%s1311_s5 + $0x28] sm:$0xff]  ;;  %p977_p2 = scmp.lt.s32.totalorder %s975_s27, %s969_s18 }
  0x1b   : > { %857 = vmatprep.subr.mxu1 %v1047_v1  ;;  %877 = vmatprep.subr.mxu0 %v1047_v1  ;;  %v555_v21 = vld [vmem:[%s1311_s5 + $0x20] sm:$0xff]  ;;  %v554_v22 = vld [vmem:[%s1311_s5 + $0x18] sm:$0xff]  ;;  %v553_v23 = vld [vmem:[%s1311_s5 + $0x10] sm:$0xff] }
  0x1c   : > { %858 = vmatpush3.msra.mxu1 %v377_v4  ;;  %878 = vmatpush3.msra.mxu0 %v564_v12  ;;  %v552_v24 = vld [vmem:[%s1311_s5 + $0x8] sm:$0xff]  ;;  %v551_v25 = vld [vmem:[%s1311_s5] sm:$0xff]  ;;  %p978_p3 = por %p977_p2, %p976_p1 }
  0x1d   : > { %860 = vmatmul.mubr.msk.f32.vlgmr.msra.gmra.mxu1 %vm374_vm1, %v376_v5  ;;  %862 = vmatprep.subr.mxu1 %v1047_v1  ;;  %v816_v28 = vld [vmem:[%s1310_s4] ss:$0 sm:$0xff] }
  0x1e   : > { %863 = vmatpush3.msra.mxu1 %v465_v6  ;;  %870 = vmatprep.mubr.msk.f32.mxu1 %vm1048_vm0, %v1047_v1  ;;  %v814_v35 = vld [vmem:[%s1308_s2] ss:$0 sm:$0xff]  ;;  %p979_p5 = pnand %p978_p3, %p972_p0 }
  0x1f   : > { %864 = vmatprep.subr.mxu1 %v1047_v1  ;;  %879 = vmatprep.subr.mxu0 %v1047_v1  ;;  %v550_v39 = vld [vmem:[#allocation2] sm:$0xff] }
  0x20   : > { %865 = vmatpush3.msra.mxu1 %v464_v7  ;;  %880 = vmatpush3.msra.mxu0 %v563_v13  ;;  %v819_v43 = vld [vmem:[%s1312_s6] ss:$0 sm:$0xff] }
  0x21   : > { %866 = vmatprep.subr.mxu1 %v1047_v1  ;;  %881 = vmatprep.subr.mxu0 %v1047_v1 }
  0x22   : > { %867 = vmatpush3.msra.mxu1 %v463_v8  ;;  %882 = vmatpush3.msra.mxu0 %v562_v14 }
  0x23   : > { %868 = vmatprep.subr.mxu1 %v1047_v1  ;;  %883 = vmatprep.subr.mxu0 %v1047_v1 }
  0x24   : > { %869 = vmatpush3.msra.mxu1 %v462_v9  ;;  %884 = vmatpush3.msra.mxu0 %v561_v15 }
  0x25   : > { %871 = vmatmul.mubr.msk.f32.vlgmr.msra.gmra.mxu1 %vm374_vm1, %v376_v5  ;;  %885 = vmatprep.subr.mxu0 %v1047_v1 }
  0x26   : > { %886 = vmatpush3.msra.mxu0 %v560_v16 }
  0x27   : > { %887 = vmatprep.subr.mxu0 %v1047_v1 }
  0x28   : > { %888 = vmatpush3.msra.mxu0 %v559_v17 }
  0x29   : > { %889 = vmatprep.subr.mxu0 %v1047_v1 }
  0x2a   : > { %890 = vmatpush3.msra.mxu0 %v558_v18 }
  0x2b   : > { %891 = vmatprep.subr.mxu0 %v1047_v1 }
  0x2c   : > { %892 = vmatpush3.msra.mxu0 %v557_v19 }
  0x2d   : > { %893 = vmatprep.subr.mxu0 %v1047_v1 }
  0x2e   : > { %894 = vmatpush3.msra.mxu0 %v556_v20 }
  0x2f   : > { %895 = vmatprep.subr.mxu0 %v1047_v1 }
  0x30   : > { %896 = vmatpush3.msra.mxu0 %v555_v21 }
  0x31   : > { %897 = vmatprep.subr.mxu0 %v1047_v1 }
  0x32   : > { %898 = vmatpush3.msra.mxu0 %v554_v22 }
  0x33   : > { %899 = vmatprep.subr.mxu0 %v1047_v1 }
  0x34   : > { %900 = vmatpush3.msra.mxu0 %v553_v23 }
  0x35   : > { %901 = vmatprep.subr.mxu0 %v1047_v1 }
  0x36   : > { %902 = vmatpush3.msra.mxu0 %v552_v24 }
  0x37   : > { %903 = vmatprep.subr.mxu0 %v1047_v1 }
  0x38   : > { %904 = vmatpush3.msra.mxu0 %v551_v25 }
  0xdd   : > { %v458_v26 = vpop.f32.mrf.mxu1 }
  0xde   : > { %v459_v36 = vadd.f32 %v814_v35, %v458_v26 }
  0xdf   : > { %v861_v27 = vpop.f32.mrf.mxu1 }
  0xe5   : > { %v539_v29 = vpop.f32.mrf.mxu1 }
  0xe6   : > { %v540_v30 = vadd.f32 %v816_v28, %v539_v29 }
  0xe7   : > { %v872_v31 = vpop.f32.mrf.mxu1 }
  0xe8   : > { %v818_v32 = vmul.f32 -1.442695, %v540_v30 }
  0xea   : > { %965 = vpow2.f32 %v818_v32 }
  0xf7   : > { %v966_v33 = vpop.eup %965 }
  0xf8   : > { %v546_v34 = vadd.f32 1.0, %v966_v33 }
  0xfa   : > { %967 = vrcp.f32 %v546_v34 }
 0x107   : > { %v968_v37 = vpop.eup %967 }
 0x108   : > { %v549_v38 = vmul.f32 %v968_v37, %v459_v36 }
 0x10a   : > { %906 = vmatmul.mubr.f32.vlgmr.msra.gmra.mxu0 %v549_v38 }
 0x1ca   : > { %v633_v40 = vpop.f32.mrf.mxu0 }
 0x1cb   : > { %v637_v41 = vadd.f32 %v633_v40, %v550_v39 }
 0x1cc   : > { %v907_v42 = vpop.f32.mrf.mxu0 }
 0x1cd   : > { %638 = vst.msk [vmem:[#allocation2] sm:$0xff] %vm374_vm1, %v637_v41 }
 0x1d4   : > { %v642_v44 = vld [vmem:[#allocation2] sm:$0xff] }
 0x1d5   : > { %v650_v45 = vadd.f32 %v819_v43, %v642_v44 }
 0x1d7   : > { %651 = vst.msk [vmem:[%s345_s8] sm:$0xff] %vm374_vm1, %v650_v45 }
 0x1d8   : > { %982 = shalt.err (!%p979_p5)
}
 0x1d9   : > { %s983_s21 = scalar_lea.hbm %s664_s16, 128  ;;  %s987_s30 = scalar_lea.hbm %s1313_s7, 256 }
 0x1da   : > { %p984_p6 = scmp.ne.s32.totalorder %s664_s16, %s983_s21  ;;  %p988_p10 = scmp.lt.s32.totalorder %s664_s16, %s1313_s7 }
 0x1db   : > { %p989_p11 = scmp.lt.s32.totalorder %s987_s30, %s983_s21 }
 0x1dc   : > { %p985_p7 = pnand %p984_p6, %p1130_p4 }
 0x1dd   : > { %p990_p12 = por %p989_p11, %p988_p10 }
 0x1de   : > { %p986_p9 = pneg %p985_p7 }
 0x1e0   : > { %p991_p13 = pnand %p990_p12, %p986_p9 }
 0x1e2   : > { %994 = shalt.err (!%p991_p13)
}
 0x1e3   : > { %908 = dma.vmem_to_hbm [thread:$0]  (%p1130_p4), %s667_s10, 128, %s664_s16, %s653_s17  }
 0x1e4 PF: > { %p914_p0 = scmp.ge.s32.totalorder %s1045_s29, 2  ;;  %s678_s15 = sand.u32 1, %s1025_s24  }
 0x1e5   : > { %s679_s18 = scalar_lea.sflag [#allocation4], %s678_s15 }
 0x1e6   : > { %p911_p1 = pnand %p914_p0, %p1137_p8 }
 0x1e8   : > { %p912_p2 = pneg %p911_p1 }
 0x1ea   : > { %1020 = dma.done.wait (%p912_p2), %s679_s18, 128  }
 0x1eb   : > { %1022 = vsyncadd (%p912_p2), %s679_s18, 4294967168  ;;  %s20_s29 = sadd.s32 1, %s1045_s29   ;;  %s1316_s24 = smov %s1029_s25 }
 0x1ec   : > { %p17_p3 = scmp.ge.s32.totalorder %s20_s29, 4   ;;  %s1317_s25 = smov %s1033_s26 }
 0x1ed   : > { %s1318_s26 = smov %s1143_s14  ;;  %s1319_s27 = smov %s1041_s28 }
 0x1ee   : > { %s1320_s28 = smov %s1322_s9  ;;  %19 = sbr.rel (!%p17_p3) target bundleno = 4 (0x4), region = 106 }
 0x1f3   :  { %684 = vsyncpa [#allocation4], 1 }
 0x1f4   :  { %686 = vsyncpa [#allocation4 + $0x1], 1 }

// kernel: tpu_custom_call.1
= control target key start
LH: loop header
LB: loop body
LE: loop exit
PB: predicated region body
PF: predicated region fallthrough
CT: control target
= control target key end

     0   :  { %12 = vsyncpa [#allocation4], 0  ;;  %s1306_s0 = inlined_call_operand.vmem [shape: f32[16,32], index: 0, kind: input, shape index: {}]   ;;  %s1307_s1 = inlined_call_operand.vmem [shape: f32[32,128], index: 1, kind: input, shape index: {}]   ;;  %s1308_s2 = inlined_call_operand.vmem [shape: f32[1,128], index: 2, kind: input, shape index: {}]   ;;  %s1309_s3 = inlined_call_operand.vmem [shape: f32[32,128], index: 3, kind: input, shape index: {}]   ;;  %s1310_s4 = inlined_call_operand.vmem [shape: f32[1,128], index: 4, kind: input, shape index: {}]   ;;  %s1311_s5 = inlined_call_operand.vmem [shape: f32[128,32], index: 5, kind: input, shape index: {}]   ;;  %s1312_s6 = inlined_call_operand.vmem [shape: f32[1,32], index: 6, kind: input, shape index: {}]   ;;  %s1313_s7 = inlined_call_operand.hbm [shape: f32[16,32], index: 7, kind: output, shape index: {}]  }
   0x1   :  { %14 = vsyncpa [#allocation4 + $0x1], 0  ;;  %s1090_s24 = smov 0   ;;  %s1092_s25 = smov 0  }
   0x2   :  { %s1094_s26 = smov 0   ;;  %s1096_s27 = smov 0  }
   0x3   :  { %s1098_s28 = smov 0   ;;  %s1100_s29 = smov 0  }
   0x4 LB: > { %s802_s30 = sadd.s32 4294967295, %s1045_s29   ;;  %s803_s8 = sadd.s32 4294967294, %s1045_s29   ;;  %s1045_s29 = sphi %s1100_s29, %s20_s29   ;;  %s1041_s28 = sphi %s1098_s28, %s1320_s28   ;;  %s1037_s27 = sphi %s1096_s27, %s1319_s27   ;;  %s1033_s26 = sphi %s1094_s26, %s1318_s26   ;;  %s1029_s25 = sphi %s1092_s25, %s1317_s25   ;;  %s1025_s24 = sphi %s1090_s24, %s1316_s24  }
   0x5   : > { %s32_s9 = sadd.s32 1, %s1041_s28  ;;  %s216_s10 = sadd.s32 1, %s1033_s26 }
   0x6   : > { %p34_p0 = scmp.ge.s32.totalorder %s32_s9, 2  ;;  %p226_p1 = scmp.ne.s32.totalorder %s1033_s26, %s1029_s25 }
   0x7   : > { %p227_p2 = scmp.eq.s32.totalorder %s802_s30, 1  ;;  %p232_p3 = scmp.ne.s32.totalorder %s1029_s25, %s1025_s24 }
   0x8   : > { %s1322_s9 = smov (%p34_p0, %s32_s9), 0  ;;  %p233_p5 = scmp.eq.s32.totalorder %s803_s8, 1 }
   0x9   : > { %p1130_p4 = por %p227_p2, %p226_p1  ;;  %s213_s12 = ssub.s32 %s1041_s28, %s1322_s9 }
   0xa   : > { %p811_p6 = scmp.ge.s32.totalorder %s1045_s29, 1  ;;  %p214_p7 = scmp.eq.s32.totalorder %s213_s12, 0 }
   0xb   : > { %p1137_p8 = por %p233_p5, %p232_p3  ;;  %p296_p9 = scmp.lt.s32.totalorder %s1045_s29, 3 }
   0xc   : > { %s1143_s14 = scalar_select %p214_p7, %s1033_s26, %s216_s10  }
   0xd   : > { %p297_p10 = pnand %p811_p6, %p296_p9 }
   0xe   : > { %p346_p11 = scmp.lt.s32.totalorder (!%p297_p10), %s1037_s27, 1  ;;  %s343_s20 = sand.u32 (!%p297_p10), 1, %s1029_s25  }
   0xf   : > { %300 = sbr.rel (%p297_p10) target bundleno = 484 (0x1e4), region = 48  ;;  %s812_s21 = sshll.u32 (!%p297_p10), %s343_s20, 3 }
  0x10   : > { %s821_s30 = sshll.u32 (!%p297_p10), %s1037_s27, 7  ;;  %s345_s8 = scalar_lea.vmem (!%p297_p10), [#allocation3], %s812_s21 }
  0x11   : > { %s666_s10 = sshll.u32 (!%p297_p10), %s345_s8, 4  ;;  %s664_s16 = scalar_lea.hbm (!%p297_p10), %s1313_s7, %s821_s30  ;;  %s667_s10 = int_to_ptr.vmem [resolvable:$true] %s666_s10 }
  0x12   : > { %s653_s17 = scalar_lea.sflag (!%p297_p10), [#allocation4], %s343_s20  ;;  %s969_s18 = scalar_lea.vmem (!%p297_p10), %s667_s10, 128 }
  0x13   : > { %p970_p12 = scmp.ne.s32.totalorder (!%p297_p10), %s667_s10, %s969_s18 }
  0x14   : > { %v380_v0 = vld [vmem:[%s1307_s1 + $0x18] sm:$0xff]  ;;  %v1047_v1 = vmov 0.0   ;;  %v379_v2 = vld [vmem:[%s1307_s1 + $0x10] sm:$0xff]  ;;  %vm1048_vm0 = vmmov 0   ;;  %vm374_vm1 = vcmask 261120   ;;  %s347_s19 = scalar_select %p346_p11, %s1037_s27, 1 }
  0x15   : > { %851 = vmatprep.subr.mxu1 %v1047_v1  ;;  %859 = vmatprep.mubr.msk.f32.mxu1 %vm1048_vm0, %v1047_v1  ;;  %375 = vst.msk [vmem:[#allocation2] sm:$0xff] %vm374_vm1, %v1047_v1  ;;  %v378_v3 = vld [vmem:[%s1307_s1 + $0x8] sm:$0xff]  ;;  %v377_v4 = vld [vmem:[%s1307_s1] sm:$0xff]  ;;  %v465_v6 = vld [vmem:[%s1309_s3 + $0x18] sm:$0xff]  ;;  %p971_p13 = pnand %p970_p12, %p1130_p4 }
  0x16   : > { %852 = vmatpush3.msra.mxu1 %v380_v0  ;;  %873 = vmatprep.subr.mxu0 %v1047_v1  ;;  %s813_s22 = sshll.u32 %s347_s19, 3  ;;  %v464_v7 = vld [vmem:[%s1309_s3 + $0x10] sm:$0xff]  ;;  %v463_v8 = vld [vmem:[%s1309_s3 + $0x8] sm:$0xff]  ;;  %v462_v9 = vld [vmem:[%s1309_s3] sm:$0xff]  ;;  %s1049_s19 = smov [#allocation3]  }
  0x17   : > { %853 = vmatprep.subr.mxu1 %v1047_v1  ;;  %905 = vmatprep.mubr.msk.f32.mxu0 %vm1048_vm0, %v1047_v1  ;;  %s349_s12 = scalar_lea.vmem %s1306_s0, %s813_s22  ;;  %v566_v10 = vld [vmem:[%s1311_s5 + $0x78] sm:$0xff]  ;;  %v565_v11 = vld [vmem:[%s1311_s5 + $0x70] sm:$0xff]  ;;  %v564_v12 = vld [vmem:[%s1311_s5 + $0x68] sm:$0xff]  ;;  %p972_p0 = pneg %p971_p13 }
  0x18   : > { %854 = vmatpush3.msra.mxu1 %v379_v2  ;;  %v376_v5 = vld [vmem:[%s349_s12] sm:$0xff]  ;;  %874 = vmatpush3.msra.mxu0 %v566_v10  ;;  %v562_v14 = vld [vmem:[%s1311_s5 + $0x58] sm:$0xff]  ;;  %v561_v15 = vld [vmem:[%s1311_s5 + $0x50] sm:$0xff]  ;;  %s973_s22 = sshll.u32 %s1049_s19, 4  ;;  %s974_s22 = int_to_ptr.vmem [resolvable:$false] %s973_s22 }
  0x19   : > { %855 = vmatprep.subr.mxu1 %v1047_v1  ;;  %875 = vmatprep.subr.mxu0 %v1047_v1  ;;  %v563_v13 = vld [vmem:[%s1311_s5 + $0x60] sm:$0xff]  ;;  %v560_v16 = vld [vmem:[%s1311_s5 + $0x48] sm:$0xff]  ;;  %v558_v18 = vld [vmem:[%s1311_s5 + $0x38] sm:$0xff]  ;;  %s975_s27 = scalar_lea.vmem %s974_s22, 256  ;;  %p976_p1 = scmp.lt.s32.totalorder %s667_s10, %s974_s22 }
  0x1a   : > { %856 = vmatpush3.msra.mxu1 %v378_v3  ;;  %876 = vmatpush3.msra.mxu0 %v565_v11  ;;  %v559_v17 = vld [vmem:[%s1311_s5 + $0x40] sm:$0xff]  ;;  %v557_v19 = vld [vmem:[%s1311_s5 + $0x30] sm:$0xff]  ;;  %v556_v20 = vld [vmem:[%s1311_s5 + $0x28] sm:$0xff]  ;;  %p977_p2 = scmp.lt.s32.totalorder %s975_s27, %s969_s18 }
  0x1b   : > { %857 = vmatprep.subr.mxu1 %v1047_v1  ;;  %877 = vmatprep.subr.mxu0 %v1047_v1  ;;  %v555_v21 = vld [vmem:[%s1311_s5 + $0x20] sm:$0xff]  ;;  %v554_v22 = vld [vmem:[%s1311_s5 + $0x18] sm:$0xff]  ;;  %v553_v23 = vld [vmem:[%s1311_s5 + $0x10] sm:$0xff] }
  0x1c   : > { %858 = vmatpush3.msra.mxu1 %v377_v4  ;;  %878 = vmatpush3.msra.mxu0 %v564_v12  ;;  %v552_v24 = vld [vmem:[%s1311_s5 + $0x8] sm:$0xff]  ;;  %v551_v25 = vld [vmem:[%s1311_s5] sm:$0xff]  ;;  %p978_p3 = por %p977_p2, %p976_p1 }
  0x1d   : > { %860 = vmatmul.mubr.msk.f32.vlgmr.msra.gmra.mxu1 %vm374_vm1, %v376_v5  ;;  %862 = vmatprep.subr.mxu1 %v1047_v1  ;;  %v816_v28 = vld [vmem:[%s1310_s4] ss:$0 sm:$0xff] }
  0x1e   : > { %863 = vmatpush3.msra.mxu1 %v465_v6  ;;  %870 = vmatprep.mubr.msk.f32.mxu1 %vm1048_vm0, %v1047_v1  ;;  %v814_v35 = vld [vmem:[%s1308_s2] ss:$0 sm:$0xff]  ;;  %p979_p5 = pnand %p978_p3, %p972_p0 }
  0x1f   : > { %864 = vmatprep.subr.mxu1 %v1047_v1  ;;  %879 = vmatprep.subr.mxu0 %v1047_v1  ;;  %v550_v39 = vld [vmem:[#allocation2] sm:$0xff] }
  0x20   : > { %865 = vmatpush3.msra.mxu1 %v464_v7  ;;  %880 = vmatpush3.msra.mxu0 %v563_v13  ;;  %v819_v43 = vld [vmem:[%s1312_s6] ss:$0 sm:$0xff] }
  0x21   : > { %866 = vmatprep.subr.mxu1 %v1047_v1  ;;  %881 = vmatprep.subr.mxu0 %v1047_v1 }
  0x22   : > { %867 = vmatpush3.msra.mxu1 %v463_v8  ;;  %882 = vmatpush3.msra.mxu0 %v562_v14 }
  0x23   : > { %868 = vmatprep.subr.mxu1 %v1047_v1  ;;  %883 = vmatprep.subr.mxu0 %v1047_v1 }
  0x24   : > { %869 = vmatpush3.msra.mxu1 %v462_v9  ;;  %884 = vmatpush3.msra.mxu0 %v561_v15 }
  0x25   : > { %871 = vmatmul.mubr.msk.f32.vlgmr.msra.gmra.mxu1 %vm374_vm1, %v376_v5  ;;  %885 = vmatprep.subr.mxu0 %v1047_v1 }
  0x26   : > { %886 = vmatpush3.msra.mxu0 %v560_v16 }
  0x27   : > { %887 = vmatprep.subr.mxu0 %v1047_v1 }
  0x28   : > { %888 = vmatpush3.msra.mxu0 %v559_v17 }
  0x29   : > { %889 = vmatprep.subr.mxu0 %v1047_v1 }
  0x2a   : > { %890 = vmatpush3.msra.mxu0 %v558_v18 }
  0x2b   : > { %891 = vmatprep.subr.mxu0 %v1047_v1 }
  0x2c   : > { %892 = vmatpush3.msra.mxu0 %v557_v19 }
  0x2d   : > { %893 = vmatprep.subr.mxu0 %v1047_v1 }
  0x2e   : > { %894 = vmatpush3.msra.mxu0 %v556_v20 }
  0x2f   : > { %895 = vmatprep.subr.mxu0 %v1047_v1 }
  0x30   : > { %896 = vmatpush3.msra.mxu0 %v555_v21 }
  0x31   : > { %897 = vmatprep.subr.mxu0 %v1047_v1 }
  0x32   : > { %898 = vmatpush3.msra.mxu0 %v554_v22 }
  0x33   : > { %899 = vmatprep.subr.mxu0 %v1047_v1 }
  0x34   : > { %900 = vmatpush3.msra.mxu0 %v553_v23 }
  0x35   : > { %901 = vmatprep.subr.mxu0 %v1047_v1 }
  0x36   : > { %902 = vmatpush3.msra.mxu0 %v552_v24 }
  0x37   : > { %903 = vmatprep.subr.mxu0 %v1047_v1 }
  0x38   : > { %904 = vmatpush3.msra.mxu0 %v551_v25 }
  0xdd   : > { %v458_v26 = vpop.f32.mrf.mxu1 }
  0xde   : > { %v459_v36 = vadd.f32 %v814_v35, %v458_v26 }
  0xdf   : > { %v861_v27 = vpop.f32.mrf.mxu1 }
  0xe5   : > { %v539_v29 = vpop.f32.mrf.mxu1 }
  0xe6   : > { %v540_v30 = vadd.f32 %v816_v28, %v539_v29 }
  0xe7   : > { %v872_v31 = vpop.f32.mrf.mxu1 }
  0xe8   : > { %v818_v32 = vmul.f32 -1.442695, %v540_v30 }
  0xea   : > { %965 = vpow2.f32 %v818_v32 }
  0xf7   : > { %v966_v33 = vpop.eup %965 }
  0xf8   : > { %v546_v34 = vadd.f32 1.0, %v966_v33 }
  0xfa   : > { %967 = vrcp.f32 %v546_v34 }
 0x107   : > { %v968_v37 = vpop.eup %967 }
 0x108   : > { %v549_v38 = vmul.f32 %v968_v37, %v459_v36 }
 0x10a   : > { %906 = vmatmul.mubr.f32.vlgmr.msra.gmra.mxu0 %v549_v38 }
 0x1ca   : > { %v633_v40 = vpop.f32.mrf.mxu0 }
 0x1cb   : > { %v637_v41 = vadd.f32 %v633_v40, %v550_v39 }
 0x1cc   : > { %v907_v42 = vpop.f32.mrf.mxu0 }
 0x1cd   : > { %638 = vst.msk [vmem:[#allocation2] sm:$0xff] %vm374_vm1, %v637_v41 }
 0x1d4   : > { %v642_v44 = vld [vmem:[#allocation2] sm:$0xff] }
 0x1d5   : > { %v650_v45 = vadd.f32 %v819_v43, %v642_v44 }
 0x1d7   : > { %651 = vst.msk [vmem:[%s345_s8] sm:$0xff] %vm374_vm1, %v650_v45 }
 0x1d8   : > { %982 = shalt.err (!%p979_p5)
}
 0x1d9   : > { %s983_s21 = scalar_lea.hbm %s664_s16, 128  ;;  %s987_s30 = scalar_lea.hbm %s1313_s7, 256 }
 0x1da   : > { %p984_p6 = scmp.ne.s32.totalorder %s664_s16, %s983_s21  ;;  %p988_p10 = scmp.lt.s32.totalorder %s664_s16, %s1313_s7 }
 0x1db   : > { %p989_p11 = scmp.lt.s32.totalorder %s987_s30, %s983_s21 }
 0x1dc   : > { %p985_p7 = pnand %p984_p6, %p1130_p4 }
 0x1dd   : > { %p990_p12 = por %p989_p11, %p988_p10 }
 0x1de   : > { %p986_p9 = pneg %p985_p7 }
 0x1e0   : > { %p991_p13 = pnand %p990_p12, %p986_p9 }
 0x1e2   : > { %994 = shalt.err (!%p991_p13)
}
 0x1e3   : > { %908 = dma.vmem_to_hbm [thread:$0]  (%p1130_p4), %s667_s10, 128, %s664_s16, %s653_s17  }
 0x1e4 PF: > { %p914_p0 = scmp.ge.s32.totalorder %s1045_s29, 2  ;;  %s678_s15 = sand.u32 1, %s1025_s24  }
 0x1e5   : > { %s679_s18 = scalar_lea.sflag [#allocation4], %s678_s15 }
 0x1e6   : > { %p911_p1 = pnand %p914_p0, %p1137_p8 }
 0x1e8   : > { %p912_p2 = pneg %p911_p1 }
 0x1ea   : > { %1020 = dma.done.wait (%p912_p2), %s679_s18, 128  }
 0x1eb   : > { %1022 = vsyncadd (%p912_p2), %s679_s18, 4294967168  ;;  %s20_s29 = sadd.s32 1, %s1045_s29   ;;  %s1316_s24 = smov %s1029_s25 }
 0x1ec   : > { %p17_p3 = scmp.ge.s32.totalorder %s20_s29, 4   ;;  %s1317_s25 = smov %s1033_s26 }
 0x1ed   : > { %s1318_s26 = smov %s1143_s14  ;;  %s1319_s27 = smov %s1041_s28 }
 0x1ee   : > { %s1320_s28 = smov %s1322_s9  ;;  %19 = sbr.rel (!%p17_p3) target bundleno = 4 (0x4), region = 106 }
 0x1f3   :  { %684 = vsyncpa [#allocation4], 1 }
 0x1f4   :  { %686 = vsyncpa [#allocation4 + $0x1], 1 }

</bundles_post_ra>
